<compile_context>
chip_gen: v6e
topology: v6e:2x2x1
jax: 0.10.0
libtpu: 0.0.40
codegen_flags: <defaults>
</compile_context>

<pallas_src>
import jax
import jax.numpy as jnp
from jax.experimental import pallas as pl
from jax.experimental.pallas import tpu as pltpu


def _round_up(x, m):
    return ((x + m - 1) // m) * m


# ---------------------------------------------------------------------------
# Path A: small vocabulary -> one-hot @ table matmul on the MXU.
# ---------------------------------------------------------------------------
def _onehot_kernel(ids_ref, table_ref, out_ref):
    # ids_ref   : VMEM (tile, 1) int32   token indices for this tile
    # table_ref : VMEM (V, E)            full table (same block every step,
    #                                    so Pallas keeps it resident)
    # out_ref   : VMEM (tile, E)
    tile = out_ref.shape[0]
    v = table_ref.shape[0]
    col_iota = jax.lax.broadcasted_iota(jnp.int32, (tile, v), 1)
    # Single broadcasted vector compare -> (tile, V) one-hot; pure VPU work.
    onehot = (ids_ref[...] == col_iota).astype(table_ref.dtype)
    out_ref[...] = jnp.dot(
        onehot, table_ref[...], preferred_element_type=jnp.float32
    ).astype(out_ref.dtype)


def _embedding_onehot(ids_flat, table, *, tile):
    n_pad = ids_flat.shape[0]
    v, e = table.shape
    return pl.pallas_call(
        _onehot_kernel,
        out_shape=jax.ShapeDtypeStruct((n_pad, e), table.dtype),
        grid_spec=pltpu.PrefetchScalarGridSpec(
            num_scalar_prefetch=0,
            grid=(n_pad // tile,),
            in_specs=[
                pl.BlockSpec((tile, 1), lambda t: (t, 0)),   # ids in VMEM
                pl.BlockSpec((v, e), lambda t: (0, 0)),      # table resident
            ],
            out_specs=pl.BlockSpec((tile, e), lambda t: (t, 0)),
        ),
        compiler_params=pltpu.CompilerParams(
            # Independent token tiles -> shard across TCs on v7x megacore.
            dimension_semantics=("parallel",),
            vmem_limit_bytes=32 * 1024 * 1024,
        ),
    )(ids_flat.reshape(n_pad, 1), table)


# ---------------------------------------------------------------------------
# Path B: large vocabulary -> table stays in HBM, cross-step double-buffered
# DMA row gather.
# ---------------------------------------------------------------------------
def _gather_kernel(ids_ref, table_hbm, out_ref, buf, sem):
    # ids_ref   : SMEM (N_pad,) int32   (scalar prefetch, DMA row addresses)
    # table_hbm : HBM  (V, E)           (memory_space=pl.ANY, no auto-DMA)
    # out_ref   : VMEM (tile, E)
    # buf       : VMEM (2, tile, E)     double-buffered gather landing zone
    # sem       : DMA semaphores (2, tile)
    tile = out_ref.shape[0]
    t = pl.program_id(0)
    nt = pl.num_programs(0)
    slot = t & 1

    def issue(step, slot_):
        base = step * tile
        for j in range(tile):                     # static unroll, tile is small
            idx = ids_ref[base + j]
            pltpu.make_async_copy(
                table_hbm.at[pl.ds(idx, 1), :],
                buf.at[slot_, pl.ds(j, 1), :],
                sem.at[slot_, j],
            ).start()

    # Prime: the very first tile has nothing to hide behind.
    @pl.when(t == 0)
    def _():
        issue(0, 0)

    # Prefetch the NEXT tile's rows into the other slot before we block on the
    # current one -> gather latency overlaps this step's output writeback.
    @pl.when(t + 1 < nt)
    def _():
        issue(t + 1, 1 - slot)

    # Wait for the current tile's rows (issued at step t-1, or primed above).
    for j in range(tile):
        pltpu.make_async_copy(
            table_hbm.at[pl.ds(0, 1), :],          # dummy src; wait only needs
            buf.at[slot, pl.ds(j, 1), :],          # dst shape + semaphore
            sem.at[slot, j],
        ).wait()

    out_ref[...] = buf[slot]


def _embedding_gather(ids_flat, table, *, tile):
    n_pad = ids_flat.shape[0]
    v, e = table.shape
    return pl.pallas_call(
        _gather_kernel,
        out_shape=jax.ShapeDtypeStruct((n_pad, e), table.dtype),
        grid_spec=pltpu.PrefetchScalarGridSpec(
            num_scalar_prefetch=1,                         # ids -> SMEM
            grid=(n_pad // tile,),
            in_specs=[pl.BlockSpec(memory_space=pl.ANY)],  # table stays in HBM
            out_specs=pl.BlockSpec((tile, e), lambda t, ids: (t, 0)),
            scratch_shapes=[
                pltpu.VMEM((2, tile, e), table.dtype),
                pltpu.SemaphoreType.DMA((2, tile)),
            ],
        ),
        compiler_params=pltpu.CompilerParams(
            # Cross-step prime/prefetch handshake needs sequential grid order.
            dimension_semantics=("arbitrary",),
            vmem_limit_bytes=32 * 1024 * 1024,
        ),
    )(ids_flat, table)


# ---------------------------------------------------------------------------
# Wrapper: nn.Embedding(num_embs, emb_size)(x)  ==  table[x]
# ---------------------------------------------------------------------------
_ONEHOT_MAX_ROWS = 1024                      # beyond this the one-hot matmul wastes MXU
_ONEHOT_MAX_TABLE_BYTES = 4 * 1024 * 1024    # double-buffered table stays <= 8 MiB VMEM


def vector_embedding(x, table):
    """Pallas equivalent of nn.Embedding lookup: table[x] for x of shape [B, S]."""
    b, s = x.shape
    v, e = table.shape
    n = b * s

    ids = x.reshape(-1).astype(jnp.int32)
    table_bytes = v * e * table.dtype.itemsize

    if v <= _ONEHOT_MAX_ROWS and table_bytes <= _ONEHOT_MAX_TABLE_BYTES:
        # Small vocab: one-hot matmul path.  256-token tiles fill the MXU M dim;
        # tiny problems collapse to a single grid step.
        tile = min(256, _round_up(n, 8))
        n_pad = _round_up(n, tile)
        if n_pad != n:
            ids = jnp.pad(ids, (0, n_pad - n))   # pad with valid index 0
        out = _embedding_onehot(ids, table, tile=tile)
    else:
        # Large vocab: pipelined DMA row gather; table never leaves HBM.
        tile = min(32, _round_up(n, 8))
        n_pad = _round_up(n, tile)
        if n_pad != n:
            ids = jnp.pad(ids, (0, n_pad - n))
        out = _embedding_gather(ids, table, tile=tile)

    return out[:n].reshape(b, s, e)


if __name__ == "__main__":
    key = jax.random.PRNGKey(0)
    k_tab, k_idx, k_tab2, k_idx2 = jax.random.split(key, 4)

    # VectorEmbedding('random', num_embs=32, emb_size=128), batch=2, seq=8.
    num_embs, emb_size = 32, 128
    batch, seq = 2, 8

    # nn.Embedding default init is N(0, 1); deterministic synthetic weights.
    table = jax.random.normal(k_tab, (num_embs, emb_size), dtype=jnp.float32)
    x = jax.random.randint(k_idx, (batch, seq), 0, num_embs, dtype=jnp.int32)

    out = jax.block_until_ready(vector_embedding(x, table))
    ref = jnp.take(table, x.reshape(-1), axis=0).reshape(batch, seq, emb_size)
    assert out.shape == (batch, seq, emb_size)
    assert out.dtype == jnp.float32
    assert jnp.allclose(out, ref, atol=1e-5, rtol=1e-5)

    # Exercise the large-vocabulary pipelined DMA-gather path as well.
    big_v = 4096
    table2 = jax.random.normal(k_tab2, (big_v, emb_size), dtype=jnp.float32)
    x2 = jax.random.randint(k_idx2, (batch, seq), 0, big_v, dtype=jnp.int32)
    out2 = jax.block_until_ready(vector_embedding(x2, table2))
    ref2 = jnp.take(table2, x2.reshape(-1), axis=0).reshape(batch, seq, emb_size)
    assert jnp.allclose(out2, ref2)

    # Multi-tile large-vocab case (grid > 1) to exercise the cross-step
    # double-buffering / prefetch logic.
    x3 = jax.random.randint(k_idx2, (4, 32), 0, big_v, dtype=jnp.int32)
    out3 = jax.block_until_ready(vector_embedding(x3, table2))
    ref3 = jnp.take(table2, x3.reshape(-1), axis=0).reshape(4, 32, emb_size)
    assert jnp.allclose(out3, ref3)

    print("KERNEL_OK")
</pallas_src>

<mosaic_0001>
module attributes {stable_mosaic.version = 11 : i64} {
  func.func @_onehot_kernel(%arg0: i32, %arg1: memref<16x1xi32, #tpu.memory_space<vmem>>, %arg2: memref<32x128xf32, #tpu.memory_space<vmem>>, %arg3: memref<16x128xf32, #tpu.memory_space<vmem>>) attributes {dimension_semantics = [#tpu.dimension_semantics<parallel>], iteration_bounds = array<i64: 1>, scalar_prefetch = 0 : i64, scratch_operands = 0 : i64, tpu.core_type = #tpu.core_type<tc>, window_params = [{transform_indices = @transform_0, window_bounds = array<i64: 16, 1>}, {pipeline_mode = #tpu.pipeline_mode<synchronous>, transform_indices = @transform_1, window_bounds = array<i64: 32, 128>}, {transform_indices = @transform_2, window_bounds = array<i64: 16, 128>}]} {
    %0 = tpu.iota {dimensions = array<i32: 1>} : vector<16x32xi32>
    %c0 = arith.constant 0 : index
    %c0_0 = arith.constant 0 : index
    %1 = vector.load %arg1[%c0, %c0_0] : memref<16x1xi32, #tpu.memory_space<vmem>>, vector<16x1xi32>
    %2 = vector.broadcast %1 : vector<16x1xi32> to vector<16x32xi32>
    %3 = arith.cmpi eq, %2, %0 : vector<16x32xi32>
    %4 = arith.extui %3 : vector<16x32xi1> to vector<16x32xi32>
    %5 = arith.sitofp %4 : vector<16x32xi32> to vector<16x32xf32>
    %c0_1 = arith.constant 0 : index
    %c0_2 = arith.constant 0 : index
    %6 = vector.load %arg2[%c0_1, %c0_2] : memref<32x128xf32, #tpu.memory_space<vmem>>, vector<32x128xf32>
    %cst = arith.constant dense<0.000000e+00> : vector<16x128xf32>
    %7 = tpu.matmul %5, %6, %cst {dimension_numbers = #tpu.dot_dimension_numbers<[1], [0], [0], [1], [0, 0, 1, 1], [], []>} : vector<16x32xf32>, vector<32x128xf32>, vector<16x128xf32> -> vector<16x128xf32>
    %c0_3 = arith.constant 0 : index
    %c0_4 = arith.constant 0 : index
    %8 = vector.load %arg3[%c0_3, %c0_4] : memref<16x128xf32, #tpu.memory_space<vmem>>, vector<16x128xf32>
    tpu.vector_store %arg3[%c0_3, %c0_4], %7 {strides = array<i32>} : memref<16x128xf32, #tpu.memory_space<vmem>>, vector<16x128xf32>,
    return
  }
  func.func @transform_0(%arg0: i32) -> (i32, i32) {
    %c0_i32 = arith.constant 0 : i32
    %c0_i32_0 = arith.constant 0 : i32
    return %arg0, %c0_i32 : i32, i32
  }
  func.func @transform_1(%arg0: i32) -> (i32, i32) {
    %c0_i32 = arith.constant 0 : i32
    %c0_i32_0 = arith.constant 0 : i32
    %c0_i32_1 = arith.constant 0 : i32
    return %c0_i32, %c0_i32_0 : i32, i32
  }
  func.func @transform_2(%arg0: i32) -> (i32, i32) {
    %c0_i32 = arith.constant 0 : i32
    %c0_i32_0 = arith.constant 0 : i32
    return %arg0, %c0_i32 : i32, i32
  }
}

</mosaic_0001>

<bundles_post_ra>
// kernel: tpu_custom_call.1
= control target key start
LH: loop header
LB: loop body
LE: loop exit
PB: predicated region body
PF: predicated region fallthrough
CT: control target
= control target key end

     0   :  { %7 = vsyncpa [#allocation3], 0  ;;  %s258_s0 = inlined_call_operand.vmem [shape: s32[16,1], index: 0, kind: input, shape index: {}]   ;;  %s259_s1 = inlined_call_operand.hbm [shape: f32[32,128], index: 1, kind: input, shape index: {}]   ;;  %s260_s2 = inlined_call_operand.hbm [shape: f32[16,128], index: 2, kind: output, shape index: {}]  }
   0x1   :  { %8 = vsyncpa [#allocation4], 0  ;;  %s219_s9 = smov [#allocation2]  }
   0x2   :  { %s16_s10 = sshll.u32 %s219_s9, 4  ;;  %s17_s10 = int_to_ptr.vmem [resolvable:$true] %s16_s10 }
   0x3   :  { %s183_s11 = scalar_lea.vmem %s17_s10, 512  ;;  %p188_p1 = scmp.lt.s32.totalorder %s17_s10, %s17_s10 }
   0x4   :  { %p184_p0 = scmp.ne.s32.totalorder %s17_s10, %s183_s11  ;;  %p189_p2 = scmp.lt.s32.totalorder %s183_s11, %s183_s11 }
   0x6   :  { %p190_p3 = por %p189_p2, %p188_p1 }
   0x8   :  { %p191_p4 = pnand %p190_p3, %p184_p0 }
   0xa   :  { %194 = shalt.err (!%p191_p4)
}
   0xb   :  { %s220_s12 = smov 128   ;;  %s221_s13 = smov 8  }
   0xc   :  { %22 = dma.hbm_to_vmem [thread:$0]  %s259_s1, 512, %s17_s10, [#allocation3], %s220_s12, %s220_s12, %s221_s13  }
   0xd   :  { %215 = dma.done.wait [#allocation3], 512  }
   0xe   :  { %216 = vsyncadd [#allocation3], 4294966784  ;;  %v222_v0 = vmov 0   ;;  %v28_v1 = vld [vmem:[%s258_s0] sm:$0xff]  ;;  %v45_v2 = vld [vmem:[#allocation2 + $0x18] sm:$0xff]  ;;  %v26_v7 = vlaneseq  ;;  %vm46_vm0 = vcmask 261120  }
   0xf   :  { %174 = vset.pattern.permute.xlu0 %v222_v0  ;;  %157 = vmatprep.subr.mxu0 %v45_v2  ;;  %v44_v3 = vld [vmem:[#allocation2 + $0x10] sm:$0xff]  ;;  %v29_v4 = vld [vmem:[%s258_s0 + $0x8] sm:$0xff]  ;;  %v42_v6 = vld [vmem:[#allocation2] sm:$0xff]  ;;  %v223_v10 = vmov 0.0   ;;  %s224_s0 = smov [#allocation5]  }
  0x10   :  { %31 = vperm.xlu0 %174, %v28_v1   ;;  %158 = vmatpush3.msra.mxu0 %v45_v2  ;;  %v43_v5 = vld [vmem:[#allocation2 + $0x8] sm:$0xff]  ;;  %v27_v8 = vand.u32 127, %v26_v7  ;;  %s135_s1 = sshll.u32 %s224_s0, 4  ;;  %s136_s1 = int_to_ptr.vmem [resolvable:$true] %s135_s1 }
  0x11   :  { %159 = vmatprep.subr.mxu0 %v44_v3  ;;  %s195_s20 = scalar_lea.vmem %s136_s1, 256  ;;  %p200_p6 = scmp.lt.s32.totalorder %s136_s1, %s136_s1 }
  0x12   :  { %160 = vmatpush3.msra.mxu0 %v44_v3  ;;  %p196_p5 = scmp.ne.s32.totalorder %s136_s1, %s195_s20  ;;  %p201_p7 = scmp.lt.s32.totalorder %s195_s20, %s195_s20 }
  0x13   :  { %161 = vmatprep.subr.mxu0 %v43_v5 }
  0x14   :  { %34 = vperm.xlu0 %174, %v29_v4   ;;  %162 = vmatpush3.msra.mxu0 %v43_v5  ;;  %p202_p8 = por %p201_p7, %p200_p6 }
  0x15   :  { %163 = vmatprep.subr.mxu0 %v42_v6 }
  0x16   :  { %164 = vmatpush3.msra.mxu0 %v42_v6  ;;  %p203_p9 = pnand %p202_p8, %p196_p5 }
  0x8b   :  { %v32_v9 = vpop.permute.xlu0 %31 }
  0x8c   :  { %vm36_vm1 = vcmp.eq.s32.totalorder %v32_v9, %v27_v8 }
  0x8d   :  { %v147_v11 = vsel %vm36_vm1, 1.0, %v223_v10 }
  0x8e   :  { %165 = vmatprep.mubr.msk.f32.mxu0 %vm46_vm0, %v147_v11 }
  0x8f   :  { %v35_v12 = vpop.permute.xlu0 %34 }
  0x90   :  { %vm37_vm2 = vcmp.eq.s32.totalorder %v35_v12, %v27_v8 }
  0x91   :  { %v148_v13 = vsel %vm37_vm2, 1.0, %v223_v10 }
  0x92   :  { %166 = vmatmul.mubr.msk.f32.vlgmr.msra.gmra.mxu0 %vm46_vm0, %v148_v13 }
 0x152   :  { %v167_v14 = vpop.f32.mrf.mxu0 }
 0x153   :  { %129 = vst [vmem:[#allocation5 + $0x8] sm:$0xff] %v167_v14 }
 0x154   :  { %v119_v15 = vpop.f32.mrf.mxu0 }
 0x155   :  { %128 = vst [vmem:[#allocation5] sm:$0xff] %v119_v15 }
 0x156   :  { %206 = shalt.err (!%p203_p9)
}
 0x157   :  { %141 = dma.vmem_to_hbm [thread:$0]  %s136_s1, 256, %s260_s2, [#allocation4], %s220_s12, %s220_s12, %s221_s13  }
 0x158   :  { %217 = dma.done.wait [#allocation4], 256  }
 0x159   :  { %218 = vsyncadd [#allocation4], 4294967040 }
 0x15a   :  { %145 = vsyncpa [#allocation3], 1 }
 0x15b   :  { %146 = vsyncpa [#allocation4], 1 }

</bundles_post_ra>
